<compile_context>
chip_gen: v6e
topology: v6e:2x2x1
jax: 0.10.0
libtpu: 0.0.40
codegen_flags: <defaults>
</compile_context>

<pallas_src>
import jax
import jax.numpy as jnp
from jax.experimental import pallas as pl
from jax.experimental.pallas import tpu as pltpu

_LANE = 128
_SUBLANE = 8


def _round_up(x: int, m: int) -> int:
    return ((x + m - 1) // m) * m


def _chip_config():
    """Return (num_tensorcores_per_chip, target_block_bytes, vmem_limit_bytes|None)."""
    kind = ""
    try:
        kind = jax.devices()[0].device_kind.lower()
    except Exception:
        pass
    if "v7" in kind:
        # v7x: 2 TensorCores/chip, ~3.2 TB/s HBM, 64 MiB VMEM per TC. Bigger
        # blocks amortize the ~0.35 us/step fixed cost; 4 resident 8 MiB
        # buffers exceed the 32 MiB scoped default, so the limit is raised.
        return 2, 8 * 1024 * 1024, 48 * 1024 * 1024
    # v5e / v6e (and unknown): single TensorCore. ~2 MiB blocks sit on the flat
    # part of the tile-size roofline and stay under all scoped-VMEM defaults.
    return 1, 2 * 1024 * 1024, None


def _pick_block_rows(rows: int, itemsize: int, num_cores: int, target_bytes: int) -> int:
    max_block_rows = max(
        _SUBLANE, (target_bytes // (_LANE * itemsize)) // _SUBLANE * _SUBLANE)
    if num_cores >= 2 and rows >= 4 * _SUBLANE:
        # Megacore (v7x): aim for >= 2 blocks per core (grid >= 4) so each TC
        # keeps double-buffering, but never shrink a block below ~512 KiB.
        min_block_rows = max(
            _SUBLANE, (512 * 1024 // (_LANE * itemsize)) // _SUBLANE * _SUBLANE)
        quarter = _round_up((rows + 3) // 4, _SUBLANE)
        half = _round_up((rows + 1) // 2, _SUBLANE)
        cand = quarter if quarter >= min_block_rows else half
        block_rows = min(max_block_rows, cand)
    else:
        # Single-TC chips: no forced split — one maximal block per grid step.
        block_rows = max_block_rows
    if rows <= block_rows:
        # Whole array in one block; a full-extent dim need not be a multiple of 8.
        return rows
    return block_rows


def _swish_kernel(x_ref, o_ref):
    x = x_ref[...]
    if x.dtype == jnp.float32:
        # Exact path for f32 outputs (no dtype round trip).
        o_ref[...] = x * jax.nn.sigmoid(x)
    else:
        # Sub-32-bit: compute in f32 on the VPU; approx reciprocal goes to the
        # EUP slot (nearly free) and its error is absorbed by the downcast.
        xf = x.astype(jnp.float32)
        sig = pl.reciprocal(1.0 + jnp.exp(-xf), approx=True)
        o_ref[...] = (xf * sig).astype(o_ref.dtype)


def swish(x: jax.Array, *, donate_input: bool = False) -> jax.Array:
    """Elementwise swish, matching x * torch.sigmoid(x)."""
    orig_shape = x.shape
    orig_dtype = x.dtype
    total = x.size
    if total == 0:
        return x
    itemsize = jnp.dtype(orig_dtype).itemsize

    # Flatten to a lane-dense (rows, 128) slab. Padding is only needed when the
    # flat size is not a multiple of 128 (lane quantum); the boundary block may
    # be sublane-partial and is handled by the cdiv grid.
    pad = (-total) % _LANE
    x_flat = x.reshape(-1)
    if pad:
        x_flat = jnp.pad(x_flat, (0, pad))
    rows = (total + pad) // _LANE
    x2d = x_flat.reshape(rows, _LANE)

    num_cores, target_bytes, vmem_limit = _chip_config()
    block_rows = _pick_block_rows(rows, itemsize, num_cores, target_bytes)
    grid = (pl.cdiv(rows, block_rows),)

    compiler_kwargs = dict(dimension_semantics=("parallel",))
    resident_bytes = 4 * block_rows * _LANE * itemsize  # 2x double-buffered in + out
    if vmem_limit is not None and resident_bytes > 32 * 1024 * 1024:
        compiler_kwargs["vmem_limit_bytes"] = vmem_limit

    out2d = pl.pallas_call(
        _swish_kernel,
        out_shape=jax.ShapeDtypeStruct((rows, _LANE), orig_dtype),
        grid_spec=pltpu.PrefetchScalarGridSpec(
            num_scalar_prefetch=0,
            grid=grid,
            in_specs=[pl.BlockSpec((block_rows, _LANE), lambda i: (i, 0))],
            out_specs=pl.BlockSpec((block_rows, _LANE), lambda i: (i, 0)),
        ),
        compiler_params=pltpu.CompilerParams(**compiler_kwargs),
        cost_estimate=pl.CostEstimate(
            flops=4 * total,
            transcendentals=total,
            bytes_accessed=2 * total * itemsize,
        ),
        input_output_aliases=({0: 0} if donate_input else {}),
    )(x2d)

    out_flat = out2d.reshape(-1)
    if pad:
        out_flat = out_flat[:total]
    return out_flat.reshape(orig_shape)


if __name__ == "__main__":
    key = jax.random.PRNGKey(0)
    # NCHW input consistent with the module's usage in SE_FBCNet_spatial.
    x = jax.random.normal(key, (2, 4, 16, 16), dtype=jnp.float32)

    y = swish(x)
    y = jax.block_until_ready(y)

    # Reference check in plain JAX.
    ref = x * jax.nn.sigmoid(x)
    assert y.shape == x.shape and y.dtype == x.dtype
    assert jnp.max(jnp.abs(y - ref)) < 1e-5

    print("KERNEL_OK")
</pallas_src>

<mosaic_0001>
module attributes {stable_mosaic.version = 11 : i64} {
  func.func @_swish_kernel(%arg0: i32, %arg1: memref<16x128xf32, #tpu.memory_space<vmem>>, %arg2: memref<16x128xf32, #tpu.memory_space<vmem>>) attributes {dimension_semantics = [#tpu.dimension_semantics<parallel>], iteration_bounds = array<i64: 1>, scalar_prefetch = 0 : i64, scratch_operands = 0 : i64, tpu.core_type = #tpu.core_type<tc>, window_params = [{transform_indices = @transform_0, window_bounds = array<i64: 16, 128>}, {transform_indices = @transform_1, window_bounds = array<i64: 16, 128>}]} {
    %c0 = arith.constant 0 : index
    %c0_0 = arith.constant 0 : index
    %0 = vector.load %arg1[%c0, %c0_0] : memref<16x128xf32, #tpu.memory_space<vmem>>, vector<16x128xf32>
    %1 = arith.negf %0 : vector<16x128xf32>
    %2 = math.exp %1 : vector<16x128xf32>
    %cst = arith.constant 1.000000e+00 : f32
    %3 = vector.broadcast %cst : f32 to vector<16x128xf32>
    %4 = arith.addf %3, %2 : vector<16x128xf32>
    %5 = arith.divf %3, %4 : vector<16x128xf32>
    %6 = arith.mulf %0, %5 : vector<16x128xf32>
    %c0_1 = arith.constant 0 : index
    %c0_2 = arith.constant 0 : index
    %7 = vector.load %arg2[%c0_1, %c0_2] : memref<16x128xf32, #tpu.memory_space<vmem>>, vector<16x128xf32>
    tpu.vector_store %arg2[%c0_1, %c0_2], %6 {strides = array<i32>} : memref<16x128xf32, #tpu.memory_space<vmem>>, vector<16x128xf32>,
    return
  }
  func.func @transform_0(%arg0: i32) -> (i32, i32) {
    %c0_i32 = arith.constant 0 : i32
    %c0_i32_0 = arith.constant 0 : i32
    return %arg0, %c0_i32 : i32, i32
  }
  func.func @transform_1(%arg0: i32) -> (i32, i32) {
    %c0_i32 = arith.constant 0 : i32
    %c0_i32_0 = arith.constant 0 : i32
    return %arg0, %c0_i32 : i32, i32
  }
}

</mosaic_0001>

<bundles_post_ra>
// kernel: tpu_custom_call.1
= control target key start
LH: loop header
LB: loop body
LE: loop exit
PB: predicated region body
PF: predicated region fallthrough
CT: control target
= control target key end

     0   :  { %6 = vsyncpa [#allocation3], 0  ;;  %s142_s0 = inlined_call_operand.hbm [shape: f32[16,128], index: 0, kind: input, shape index: {}]   ;;  %s143_s1 = inlined_call_operand.hbm [shape: f32[16,128], index: 1, kind: output, shape index: {}]  }
   0x1   :  { %7 = vsyncpa [#allocation4], 0  ;;  %s116_s6 = smov [#allocation2]  }
   0x2   :  { %s13_s7 = sshll.u32 %s116_s6, 4  ;;  %s14_s7 = int_to_ptr.vmem [resolvable:$true] %s13_s7 }
   0x3   :  { %s80_s8 = scalar_lea.vmem %s14_s7, 256  ;;  %p85_p1 = scmp.lt.s32.totalorder %s14_s7, %s14_s7 }
   0x4   :  { %p81_p0 = scmp.ne.s32.totalorder %s14_s7, %s80_s8  ;;  %p86_p2 = scmp.lt.s32.totalorder %s80_s8, %s80_s8 }
   0x6   :  { %p87_p3 = por %p86_p2, %p85_p1 }
   0x8   :  { %p88_p4 = pnand %p87_p3, %p81_p0 }
   0xa   :  { %91 = shalt.err (!%p88_p4)
}
   0xb   :  { %s117_s9 = smov 128   ;;  %s118_s10 = smov 8  }
   0xc   :  { %19 = dma.hbm_to_vmem [thread:$0]  %s142_s0, 256, %s14_s7, [#allocation3], %s117_s9, %s117_s9, %s118_s10  }
   0xd   :  { %112 = dma.done.wait [#allocation3], 256  }
   0xe   :  { %113 = vsyncadd [#allocation3], 4294967040  ;;  %v23_v0 = vld [vmem:[#allocation2] sm:$0xff]  ;;  %v24_v1 = vld [vmem:[#allocation2 + $0x8] sm:$0xff]  ;;  %s119_s13 = smov [#allocation5]  }
   0xf   :  { %v58_v2 = vmul.f32 -1.442695, %v23_v0  ;;  %v59_v3 = vmul.f32 -1.442695, %v24_v1  ;;  %s46_s14 = sshll.u32 %s119_s13, 4  ;;  %s47_s14 = int_to_ptr.vmem [resolvable:$true] %s46_s14 }
  0x10   :  { %s92_s0 = scalar_lea.vmem %s47_s14, 256  ;;  %p97_p6 = scmp.lt.s32.totalorder %s47_s14, %s47_s14 }
  0x11   :  { %64 = vpow2.f32 %v58_v2  ;;  %p93_p5 = scmp.ne.s32.totalorder %s47_s14, %s92_s0  ;;  %p98_p7 = scmp.lt.s32.totalorder %s92_s0, %s92_s0 }
  0x12   :  { %66 = vpow2.f32 %v59_v3 }
  0x13   :  { %p99_p8 = por %p98_p7, %p97_p6 }
  0x15   :  { %p100_p9 = pnand %p99_p8, %p93_p5 }
  0x1e   :  { %v65_v4 = vpop.eup %64 }
  0x1f   :  { %v67_v5 = vpop.eup %66  ;;  %v31_v6 = vadd.f32 1.0, %v65_v4 }
  0x20   :  { %v32_v7 = vadd.f32 1.0, %v67_v5 }
  0x21   :  { %68 = vrcp.f32 %v31_v6 }
  0x22   :  { %70 = vrcp.f32 %v32_v7 }
  0x2e   :  { %v69_v8 = vpop.eup %68 }
  0x2f   :  { %v71_v9 = vpop.eup %70  ;;  %v37_v10 = vmul.f32 %v69_v8, %v23_v0 }
  0x30   :  { %v38_v11 = vmul.f32 %v71_v9, %v24_v1 }
  0x31   :  { %39 = vst [vmem:[#allocation5] sm:$0xff] %v37_v10 }
  0x32   :  { %40 = vst [vmem:[#allocation5 + $0x8] sm:$0xff] %v38_v11 }
  0x33   :  { %103 = shalt.err (!%p100_p9)
}
  0x34   :  { %52 = dma.vmem_to_hbm [thread:$0]  %s47_s14, 256, %s143_s1, [#allocation4], %s117_s9, %s117_s9, %s118_s10  }
  0x35   :  { %114 = dma.done.wait [#allocation4], 256  }
  0x36   :  { %115 = vsyncadd [#allocation4], 4294967040 }
  0x37   :  { %56 = vsyncpa [#allocation3], 1 }
  0x38   :  { %57 = vsyncpa [#allocation4], 1 }

</bundles_post_ra>
